<compile_context>
chip_gen: v7x
topology: tpu7x:2x2x1
jax: 0.10.0
libtpu: 0.0.40
codegen_flags: <defaults>
</compile_context>

<pallas_src>
import functools

import jax
import jax.numpy as jnp
import numpy as np
from jax.experimental import pallas as pl
from jax.experimental.pallas import tpu as pltpu


# ------------------------------ small helpers ------------------------------ #
def _round_up(x: int, m: int) -> int:
    return ((x + m - 1) // m) * m


# ---------------- host-side interpolation plan (cached, exact) ------------- #
@functools.lru_cache(maxsize=64)
def _build_plan(l_in, l_out, mode, align_corners, tn, n_pad):
    """Exact (integer / float64) interpolation plan.

    Returns:
      i0     : (1, n_pad) int32   left source index per output column
      w0     : (1, n_pad) float32 weight of x[i0]
      w1     : (1, n_pad) float32 weight of x[min(i0+1, L_in-1)]
      kstart : (n_tiles,) int32   first K block each output tile needs (SMEM)
      tk, k_grid, k_pad : ints    band-aware K tiling
    """
    j = np.arange(l_out, dtype=np.int64)
    if mode == "nearest":
        i0 = np.clip((j * l_in) // l_out, 0, l_in - 1)
        i1 = i0
        w0 = np.ones(l_out, dtype=np.float64)
        w1 = np.zeros(l_out, dtype=np.float64)
    elif mode == "linear":
        if align_corners:
            if l_out > 1:
                src = j.astype(np.float64) * ((l_in - 1) / (l_out - 1))
            else:
                src = np.zeros(l_out, dtype=np.float64)  # PyTorch: src = 0
        else:
            src = (j.astype(np.float64) + 0.5) * (l_in / l_out) - 0.5
            src = np.clip(src, 0.0, float(l_in - 1))
        i0 = np.clip(np.floor(src).astype(np.int64), 0, l_in - 1)
        i1 = np.clip(i0 + 1, 0, l_in - 1)
        w1 = src - i0.astype(np.float64)
        w0 = 1.0 - w1
    else:
        # TODO(synk): 'area'/'bicubic'/'bilinear'/'trilinear' not supported in 1D port.
        raise NotImplementedError(f"mode {mode!r} not supported for 1D resampling")

    i0_pad = np.zeros((1, n_pad), dtype=np.int32)
    w0_pad = np.zeros((1, n_pad), dtype=np.float32)
    w1_pad = np.zeros((1, n_pad), dtype=np.float32)
    i0_pad[0, :l_out] = i0
    w0_pad[0, :l_out] = w0
    w1_pad[0, :l_out] = w1

    # K band per output tile (<= 2 taps per column, monotone source indices).
    n_tiles = n_pad // tn
    lo = np.minimum(i0, i1)
    hi = np.maximum(i0, i1)
    tile_lo = np.zeros(n_tiles, dtype=np.int64)
    tile_hi = np.zeros(n_tiles, dtype=np.int64)
    for t in range(n_tiles):
        j0 = t * tn
        j1 = min((t + 1) * tn, l_out)  # every tile contains >= 1 real column
        tile_lo[t] = lo[j0:j1].min()
        tile_hi[t] = hi[j0:j1].max()
    max_band = int((tile_hi - tile_lo + 1).max())

    tk = min(512, _round_up(max_band, 128))     # band-aware K tile
    k_pad = _round_up(l_in, tk)
    total_k_blocks = k_pad // tk
    b_lo = tile_lo // tk
    b_hi = tile_hi // tk
    k_grid = int((b_hi - b_lo + 1).max())
    # Clamp so kstart + k_grid never runs past the padded K extent; extra
    # blocks visited by shorter bands only contribute zero-weight rows.
    kstart = np.clip(b_lo, 0, total_k_blocks - k_grid).astype(np.int32)
    return i0_pad, w0_pad, w1_pad, kstart, tk, k_grid, k_pad


# -------------------- Pallas kernels (built & cached per geometry) ---------- #
@functools.lru_cache(maxsize=64)
def _build_resample_fn(m_pad, k_pad, n_pad, l_in, tm, tk, tn, k_grid,
                       compute_dtype, high_precision):
    n_tiles = n_pad // tn
    m_tiles = m_pad // tm
    prec = jax.lax.Precision.HIGHEST if high_precision else None

    def synth_w_tile(i0_blk, w0_blk, w1_blk, row_off):
        # W[r, c] = w0[c]*[r == i0[c]] + w1[c]*[r == i1[c]],  i1 = min(i0+1, L_in-1)
        # (when i0 == i1 the weights add -> w0 + w1, matching dense-W semantics)
        row = jax.lax.broadcasted_iota(jnp.int32, (tk, tn), 0) + row_off
        i1_blk = jnp.minimum(i0_blk + 1, l_in - 1)
        return (jnp.where(row == i0_blk, w0_blk, 0)
                + jnp.where(row == i1_blk, w1_blk, 0))

    if k_grid == 1:
        # Common (upsampling) case: single K block per output tile — no
        # accumulator scratch, no pl.when, direct lane-dense store.
        def kernel(ks_ref, i0_ref, w0_ref, w1_ref, x_ref, o_ref):
            j = pl.program_id(0)
            w_tile = synth_w_tile(i0_ref[...], w0_ref[...], w1_ref[...],
                                  ks_ref[j] * tk)
            o_ref[...] = jnp.dot(
                x_ref[...], w_tile,
                preferred_element_type=jnp.float32,
                precision=prec).astype(o_ref.dtype)

        grid = (n_tiles, m_tiles)
        vec_spec = pl.BlockSpec((1, tn), lambda j, i, ks: (0, j))
        in_specs = [vec_spec, vec_spec, vec_spec,
                    pl.BlockSpec((tm, tk), lambda j, i, ks: (i, ks[j]))]
        out_specs = pl.BlockSpec((tm, tn), lambda j, i, ks: (i, j))
        scratch_shapes = []
        dim_sem = ("parallel", "parallel")
    else:
        # Wide-band (downsampling) case: accumulate over the K band.
        def kernel(ks_ref, i0_ref, w0_ref, w1_ref, x_ref, o_ref, acc_ref):
            j = pl.program_id(0)
            k = pl.program_id(2)

            @pl.when(k == 0)
            def _():
                acc_ref[...] = jnp.zeros_like(acc_ref)

            w_tile = synth_w_tile(i0_ref[...], w0_ref[...], w1_ref[...],
                                  (ks_ref[j] + k) * tk)
            acc_ref[...] += jnp.dot(
                x_ref[...], w_tile,
                preferred_element_type=jnp.float32, precision=prec)

            @pl.when(k == pl.num_programs(2) - 1)
            def _():
                o_ref[...] = acc_ref[...].astype(o_ref.dtype)

        grid = (n_tiles, m_tiles, k_grid)
        vec_spec = pl.BlockSpec((1, tn), lambda j, i, k, ks: (0, j))
        in_specs = [vec_spec, vec_spec, vec_spec,
                    pl.BlockSpec((tm, tk), lambda j, i, k, ks: (i, ks[j] + k))]
        out_specs = pl.BlockSpec((tm, tn), lambda j, i, k, ks: (i, j))
        scratch_shapes = [pltpu.VMEM((tm, tn), jnp.float32)]
        dim_sem = ("parallel", "parallel", "arbitrary")

    return pl.pallas_call(
        kernel,
        out_shape=jax.ShapeDtypeStruct((m_pad, n_pad), compute_dtype),
        grid_spec=pltpu.PrefetchScalarGridSpec(
            num_scalar_prefetch=1,         # kstart -> SMEM, used in index_maps
            grid=grid,
            in_specs=in_specs,
            out_specs=out_specs,
            scratch_shapes=scratch_shapes),
        compiler_params=pltpu.CompilerParams(
            dimension_semantics=dim_sem,
            vmem_limit_bytes=32 * 1024 * 1024),
    )


# ------------------------------- module wrapper ----------------------------- #
class Resample:
    """JAX/Pallas port of torchtime.transforms.Resample for NCL time series."""

    def __init__(self, sz=None, scale_factor=None, mode="nearest", align_corners=False):
        self.sz = sz
        self.scale_factor = scale_factor
        self.mode = mode
        self.align_corners = bool(align_corners) if align_corners is not None else False

    def __call__(self, ts: jax.Array) -> jax.Array:
        # ts: (N, C, L_in) — same NCL convention as torch.nn.functional.interpolate.
        n, c, l_in = ts.shape
        if self.sz is not None:
            sz = self.sz[0] if isinstance(self.sz, (tuple, list)) else self.sz
            l_out = int(sz)
        else:
            sf = self.scale_factor
            if isinstance(sf, (tuple, list)):
                sf = sf[0]
            l_out = int(np.floor(l_in * float(sf)))

        # compute dtype: keep bf16 narrow (native MXU path); everything else f32
        if ts.dtype == jnp.bfloat16:
            cdt, high_prec = jnp.bfloat16, False
        else:
            cdt, high_prec = jnp.float32, True   # PyTorch-parity f32 matmul

        m = n * c

        # ---- output-length (N) tiling: lane-dense, MXU-friendly (>=256 wide) ----
        n_pad0 = _round_up(l_out, 128)
        if n_pad0 >= 1024:
            tn = 512
        elif n_pad0 >= 512:
            tn = 256
        else:
            tn = n_pad0            # 128/256/384: one full-width lane-dense tile
        n_pad = _round_up(l_out, tn)

        # ---- host plan (exact indices/weights, band-aware K tiling) ----
        i0_np, w0_np, w1_np, ks_np, tk, k_grid, k_pad = _build_plan(
            l_in, l_out, self.mode, self.align_corners, tn, n_pad)

        # ---- M (rows = N*C) tiling ----
        m8 = max(_round_up(m, 8), 8)
        if m8 <= 512:
            tm = m8
        elif m8 % 512 == 0:
            tm = 512
        else:
            tm = 256
        m_pad = _round_up(m8, tm)

        # ---- operands ----
        x2d = ts.reshape(m, l_in)
        if not jnp.issubdtype(x2d.dtype, jnp.floating):
            # TODO(synk): integer inputs > 2^24 routed via f32 are not bit-exact.
            x2d = x2d.astype(jnp.float32)
        x2d = x2d.astype(cdt)
        x_pad = jnp.pad(x2d, ((0, m_pad - m), (0, k_pad - l_in)))

        i0 = jnp.asarray(i0_np)                 # (1, n_pad) int32
        w0 = jnp.asarray(w0_np).astype(cdt)     # (1, n_pad) compute dtype
        w1 = jnp.asarray(w1_np).astype(cdt)     # (1, n_pad) compute dtype
        kstart = jnp.asarray(ks_np)             # (n_tiles,) int32 -> SMEM prefetch

        fn = _build_resample_fn(m_pad, k_pad, n_pad, l_in, tm, tk, tn, k_grid,
                                cdt, high_prec)
        out_pad = fn(kstart, i0, w0, w1, x_pad)
        out2d = out_pad[:m, :l_out]
        return out2d.reshape(n, c, l_out).astype(ts.dtype)

    def __repr__(self):
        return (self.__class__.__name__
                + "(size={},scale_factor={},mode={},align_corners={})".format(
                    self.sz, self.scale_factor, self.mode, self.align_corners))


# ---------------------------------- demo ------------------------------------ #
def _numpy_ref(x, l_out, mode, align_corners):
    n, c, l_in = x.shape
    j = np.arange(l_out, dtype=np.int64)
    if mode == "nearest":
        src = np.clip((j * l_in) // l_out, 0, l_in - 1)
        return x[:, :, src]
    if align_corners:
        srcf = (j.astype(np.float64) * ((l_in - 1) / (l_out - 1))
                if l_out > 1 else np.zeros(l_out, dtype=np.float64))
    else:
        srcf = np.clip((j + 0.5) * (l_in / l_out) - 0.5, 0.0, float(l_in - 1))
    i0 = np.clip(np.floor(srcf).astype(np.int64), 0, l_in - 1)
    i1 = np.clip(i0 + 1, 0, l_in - 1)
    w1 = srcf - i0
    w0 = 1.0 - w1
    return x[:, :, i0] * w0 + x[:, :, i1] * w1


if __name__ == "__main__":
    key = jax.random.PRNGKey(0)
    k1, k2 = jax.random.split(key)

    # small up/down-sample cases on (2, 4, 16) — exercise the k_grid == 1 kernel
    N, C, L_IN = 2, 4, 16
    x = jax.random.normal(k1, (N, C, L_IN), dtype=jnp.float32)
    x_np = np.asarray(x, dtype=np.float64)

    cases = [
        dict(sz=32, scale_factor=None, mode="linear", align_corners=False),
        dict(sz=None, scale_factor=2.0, mode="nearest", align_corners=False),
        dict(sz=32, scale_factor=None, mode="linear", align_corners=True),
        dict(sz=8, scale_factor=None, mode="linear", align_corners=False),
    ]
    for cfg in cases:
        rs = Resample(**cfg)
        y = jax.block_until_ready(rs(x))
        l_out = (int(cfg["sz"]) if cfg["sz"] is not None
                 else int(np.floor(L_IN * float(cfg["scale_factor"]))))
        ref = _numpy_ref(x_np, l_out, cfg["mode"], cfg["align_corners"])
        assert y.shape == (N, C, l_out), (y.shape, l_out)
        np.testing.assert_allclose(np.asarray(y), ref, rtol=1e-5, atol=1e-5)

    # larger downsample (band spans several K blocks) — accumulator kernel path
    xd = jax.random.normal(k2, (2, 4, 1024), dtype=jnp.float32)
    rs = Resample(sz=96, scale_factor=None, mode="linear", align_corners=False)
    yd = jax.block_until_ready(rs(xd))
    refd = _numpy_ref(np.asarray(xd, dtype=np.float64), 96, "linear", False)
    np.testing.assert_allclose(np.asarray(yd), refd, rtol=1e-5, atol=1e-5)

    # bf16 input — native bf16 MXU path (weights bf16, f32 accumulate in-kernel)
    xb = x.astype(jnp.bfloat16)
    rs = Resample(sz=32, scale_factor=None, mode="linear", align_corners=False)
    yb = jax.block_until_ready(rs(xb))
    assert yb.dtype == jnp.bfloat16
    refb = _numpy_ref(np.asarray(xb, dtype=np.float64), 32, "linear", False)
    np.testing.assert_allclose(np.asarray(yb, dtype=np.float64), refb,
                               rtol=3e-2, atol=3e-2)

    print("KERNEL_OK")
</pallas_src>

<mosaic_0001>
module attributes {stable_mosaic.version = 11 : i64} {
  func.func @kernel(%arg0: i32, %arg1: i32, %arg2: memref<1xi32, #tpu.memory_space<smem>>, %arg3: memref<1x128xi32, #tpu.memory_space<vmem>>, %arg4: memref<1x128xf32, #tpu.memory_space<vmem>>, %arg5: memref<1x128xf32, #tpu.memory_space<vmem>>, %arg6: memref<8x128xf32, #tpu.memory_space<vmem>>, %arg7: memref<8x128xf32, #tpu.memory_space<vmem>>) attributes {dimension_semantics = [#tpu.dimension_semantics<parallel>, #tpu.dimension_semantics<parallel>], iteration_bounds = array<i64: 1, 1>, scalar_prefetch = 1 : i64, scratch_operands = 0 : i64, tpu.core_type = #tpu.core_type<tc>, window_params = [{transform_indices = @transform_0, window_bounds = array<i64: 1, 128>}, {transform_indices = @transform_1, window_bounds = array<i64: 1, 128>}, {transform_indices = @transform_2, window_bounds = array<i64: 1, 128>}, {transform_indices = @transform_3, window_bounds = array<i64: 8, 128>}, {transform_indices = @transform_4, window_bounds = array<i64: 8, 128>}]} {
    %c0 = arith.constant 0 : index
    %c0_0 = arith.constant 0 : index
    %0 = vector.load %arg3[%c0, %c0_0] : memref<1x128xi32, #tpu.memory_space<vmem>>, vector<1x128xi32>
    %c0_1 = arith.constant 0 : index
    %c0_2 = arith.constant 0 : index
    %1 = vector.load %arg4[%c0_1, %c0_2] : memref<1x128xf32, #tpu.memory_space<vmem>>, vector<1x128xf32>
    %c0_3 = arith.constant 0 : index
    %c0_4 = arith.constant 0 : index
    %2 = vector.load %arg5[%c0_3, %c0_4] : memref<1x128xf32, #tpu.memory_space<vmem>>, vector<1x128xf32>
    %3 = arith.index_cast %arg0 : i32 to index
    %4 = memref.load %arg2[%3] : memref<1xi32, #tpu.memory_space<smem>>
    %c128_i32 = arith.constant 128 : i32
    %5 = arith.muli %4, %c128_i32 : i32
    %6 = tpu.iota {dimensions = array<i32: 0>} : vector<128x128xi32>
    %7 = vector.broadcast %5 : i32 to vector<128x128xi32>
    %8 = arith.addi %6, %7 : vector<128x128xi32>
    %c1_i32 = arith.constant 1 : i32
    %9 = vector.broadcast %c1_i32 : i32 to vector<1x128xi32>
    %10 = arith.addi %0, %9 : vector<1x128xi32>
    %c15_i32 = arith.constant 15 : i32
    %11 = vector.broadcast %c15_i32 : i32 to vector<1x128xi32>
    %12 = arith.minsi %10, %11 : vector<1x128xi32>
    %13 = vector.broadcast %0 : vector<1x128xi32> to vector<128x128xi32>
    %14 = arith.cmpi eq, %8, %13 : vector<128x128xi32>
    %c0_i32 = arith.constant 0 : i32
    %15 = arith.sitofp %c0_i32 : i32 to f32
    %16 = vector.shape_cast %1 : vector<1x128xf32> to vector<1x128xf32>
    %17 = vector.broadcast %16 : vector<1x128xf32> to vector<128x128xf32>
    %18 = vector.broadcast %15 : f32 to vector<128x128xf32>
    %19 = arith.select %14, %17, %18 : vector<128x128xi1>, vector<128x128xf32>
    %20 = vector.broadcast %12 : vector<1x128xi32> to vector<128x128xi32>
    %21 = arith.cmpi eq, %8, %20 : vector<128x128xi32>
    %c0_i32_5 = arith.constant 0 : i32
    %22 = arith.sitofp %c0_i32_5 : i32 to f32
    %23 = vector.shape_cast %2 : vector<1x128xf32> to vector<1x128xf32>
    %24 = vector.broadcast %23 : vector<1x128xf32> to vector<128x128xf32>
    %25 = vector.broadcast %22 : f32 to vector<128x128xf32>
    %26 = arith.select %21, %24, %25 : vector<128x128xi1>, vector<128x128xf32>
    %27 = arith.addf %19, %26 : vector<128x128xf32>
    %c0_6 = arith.constant 0 : index
    %c0_7 = arith.constant 0 : index
    %28 = vector.load %arg6[%c0_6, %c0_7] : memref<8x128xf32, #tpu.memory_space<vmem>>, vector<8x128xf32>
    %cst = arith.constant dense<0.000000e+00> : vector<8x128xf32>
    %29 = tpu.matmul %28, %27, %cst {dimension_numbers = #tpu.dot_dimension_numbers<[1], [0], [0], [1], [0, 0, 1, 1], [], []>, precision = #tpu.contract_precision<fp32>} : vector<8x128xf32>, vector<128x128xf32>, vector<8x128xf32> -> vector<8x128xf32>
    %c0_8 = arith.constant 0 : index
    %c0_9 = arith.constant 0 : index
    %30 = vector.load %arg7[%c0_8, %c0_9] : memref<8x128xf32, #tpu.memory_space<vmem>>, vector<8x128xf32>
    tpu.vector_store %arg7[%c0_8, %c0_9], %29 {strides = array<i32>} : memref<8x128xf32, #tpu.memory_space<vmem>>, vector<8x128xf32>,
    return
  }
  func.func @transform_0(%arg0: i32, %arg1: i32, %arg2: memref<1xi32, #tpu.memory_space<smem>>) -> (i32, i32) {
    %c0_i32 = arith.constant 0 : i32
    %c0_i32_0 = arith.constant 0 : i32
    return %c0_i32, %arg0 : i32, i32
  }
  func.func @transform_1(%arg0: i32, %arg1: i32, %arg2: memref<1xi32, #tpu.memory_space<smem>>) -> (i32, i32) {
    %c0_i32 = arith.constant 0 : i32
    %c0_i32_0 = arith.constant 0 : i32
    return %c0_i32, %arg0 : i32, i32
  }
  func.func @transform_2(%arg0: i32, %arg1: i32, %arg2: memref<1xi32, #tpu.memory_space<smem>>) -> (i32, i32) {
    %c0_i32 = arith.constant 0 : i32
    %c0_i32_0 = arith.constant 0 : i32
    return %c0_i32, %arg0 : i32, i32
  }
  func.func @transform_3(%arg0: i32, %arg1: i32, %arg2: memref<1xi32, #tpu.memory_space<smem>>) -> (i32, i32) {
    %0 = arith.index_cast %arg0 : i32 to index
    %1 = memref.load %arg2[%0] : memref<1xi32, #tpu.memory_space<smem>>
    %c0_i32 = arith.constant 0 : i32
    return %arg1, %1 : i32, i32
  }
  func.func @transform_4(%arg0: i32, %arg1: i32, %arg2: memref<1xi32, #tpu.memory_space<smem>>) -> (i32, i32) {
    %c0_i32 = arith.constant 0 : i32
    return %arg1, %arg0 : i32, i32
  }
}

</mosaic_0001>

<bundles_post_ra>
// kernel: tpu_custom_call.1
= control target key start
LH: loop header
LB: loop body
LE: loop exit
PB: predicated region body
PF: predicated region fallthrough
CT: control target
= control target key end

     0   :  { %v42_v1 = vlaneseq  ;;  %v1339_v2 = vmov 0.0|0.0   ;;  %vm1340_vm0 = vmmov 0   ;;  %v1341_v6 = vmov 0.0   ;;  %s1841_s0 = inlined_call_operand.<no memory space> [shape: s32[1], index: 0, kind: input, shape index: {}]   ;;  %s1842_s1 = inlined_call_operand.vmem [shape: s32[1,128], index: 1, kind: input, shape index: {}]   ;;  %s1843_s2 = inlined_call_operand.vmem [shape: f32[1,128], index: 2, kind: input, shape index: {}]   ;;  %s1844_s3 = inlined_call_operand.vmem [shape: f32[1,128], index: 3, kind: input, shape index: {}]   ;;  %s1845_s4 = inlined_call_operand.vmem [shape: f32[8,128], index: 4, kind: input, shape index: {}]   ;;  %s1846_s5 = inlined_call_operand.hbm [shape: f32[8,128], index: 5, kind: output, shape index: {}]  }
   0x1   :  { %v37_v0 = vld [vmem:[%s1842_s1] sm:$0x1]  ;;  %s843_s22 = sshll.u32 %s1841_s0, 7  ;;  %1158 = vmatprep.subr.bf16.mxu1 %v1339_v2  ;;  %1230 = vmatprep.subr.bf16.mxu0 %v1339_v2 }
   0x2   :  { %v1381_v3 = vstv %s843_s22  ;;  %v76_v4 = vadd.s32 1, %v37_v0  ;;  %v1383_v5 = vshrl.u32 %v42_v1, 7  ;;  %980 = vmatprep.mubr.msk.f32.mxu1 %vm1340_vm0, %v1341_v6  ;;  %1085 = vmatprep.mubr.msk.f32.mxu0 %vm1340_vm0, %v1341_v6 }
   0x3   :  { %11 = vsyncpa [#allocation5], 0  ;;  %v1400_v15 = vld [vmem:[%s1843_s2] ss:$0 sm:$0xff]  ;;  %p32_p0 = scmp.lt.s32.totalorder %s1841_s0, 0 }
   0x4   :  { %vm77_vm1 = vcmp.lt.s32.totalorder %v76_v4, 15  ;;  %v44_v7 = vadd.s32 8, %v1383_v5  ;;  %v60_v8 = vadd.s32 %v1381_v3, %v1383_v5  ;;  %v81_v10 = vsub.s32 0, %v1383_v5  ;;  %v1405_v16 = vld [vmem:[%s1844_s3] ss:$0 sm:$0xff] }
   0x5   :  { %v78_v9 = vsel %vm77_vm1, %v76_v4, 15  ;;  %v45_v11 = vadd.s32 16, %v1383_v5  ;;  %v46_v12 = vadd.s32 24, %v1383_v5  ;;  %v47_v13 = vadd.s32 32, %v1383_v5  ;;  %s1848_s0 = smov (!%p32_p0, %s1841_s0), 0 }
   0x6   :  { %v48_v14 = vadd.s32 40, %v1383_v5  ;;  %v61_v17 = vadd.s32 %v1381_v3, %v44_v7  ;;  %v1408_v18 = vrot.slane %v37_v0, %v81_v10  ;;  %v1410_v19 = vrot.slane %v78_v9, %v81_v10  ;;  %s842_s30 = sshll.u32 %s1848_s0, 3 }
   0x7   :  { %v49_v20 = vadd.s32 48, %v1383_v5  ;;  %v62_v21 = vadd.s32 %v1381_v3, %v45_v11  ;;  %v63_v22 = vadd.s32 %v1381_v3, %v46_v12  ;;  %v64_v23 = vadd.s32 %v1381_v3, %v47_v13  ;;  %s35_s7 = scalar_lea.vmem %s1845_s4, %s842_s30  ;;  %s1342_s4 = smov [#allocation4]  }
   0x8   :  { %v65_v24 = vadd.s32 %v1381_v3, %v48_v14  ;;  %vm83_vm2 = vcmp.eq.s32.totalorder %v60_v8, %v1408_v18  ;;  %vm84_vm3 = vcmp.eq.s32.totalorder %v61_v17, %v1408_v18  ;;  %vm125_vm4 = vcmp.eq.s32.totalorder %v60_v8, %v1410_v19  ;;  %s828_s8 = sshll.u32 %s1342_s4, 4  ;;  %s829_s8 = int_to_ptr.vmem [resolvable:$true] %s828_s8 }
   0x9   :  { %vm126_vm5 = vcmp.eq.s32.totalorder %v61_v17, %v1410_v19  ;;  %v105_v25 = vsel %vm83_vm2, %v1400_v15, 0.0  ;;  %v106_v26 = vsel %vm84_vm3, %v1400_v15, 0.0  ;;  %v147_v27 = vsel %vm125_vm4, %v1405_v16, 0.0  ;;  %s1315_s9 = scalar_lea.vmem %s829_s8, 128  ;;  %p1320_p2 = scmp.lt.s32.totalorder %s829_s8, %s829_s8 }
   0xa   :  { %v148_v28 = vsel %vm126_vm5, %v1405_v16, 0.0  ;;  %v1425_v29 = vadd.f32 %v147_v27, %v105_v25  ;;  %vm85_vm6 = vcmp.eq.s32.totalorder %v62_v21, %v1408_v18  ;;  %vm86_vm7 = vcmp.eq.s32.totalorder %v63_v22, %v1408_v18  ;;  %p1316_p1 = scmp.ne.s32.totalorder %s829_s8, %s1315_s9  ;;  %p1321_p3 = scmp.lt.s32.totalorder %s1315_s9, %s1315_s9 }
   0xb   :  { %v1427_v30 = vadd.f32 %v148_v28, %v106_v26  ;;  %v107_v31 = vsel %vm85_vm6, %v1400_v15, 0.0  ;;  %v108_v32 = vsel %vm86_vm7, %v1400_v15, 0.0  ;;  %vm127_vm8 = vcmp.eq.s32.totalorder %v62_v21, %v1410_v19 }
   0xc   :  { %vm128_vm9 = vcmp.eq.s32.totalorder %v63_v22, %v1410_v19  ;;  %v181_v33 = vand.u32 4294901760, %v1425_v29  ;;  %v149_v35 = vsel %vm127_vm8, %v1405_v16, 0.0  ;;  %vm87_vm10 = vcmp.eq.s32.totalorder %v64_v23, %v1408_v18  ;;  %p1322_p4 = por %p1321_p3, %p1320_p2 }
   0xd   :  { %v184_v34 = vand.u32 4294901760, %v1427_v30  ;;  %v150_v36 = vsel %vm128_vm9, %v1405_v16, 0.0  ;;  %v1439_v37 = vadd.f32 %v149_v35, %v107_v31  ;;  %vm88_vm11 = vcmp.eq.s32.totalorder %v65_v24, %v1408_v18 }
   0xe   :  { %v1441_v38 = vadd.f32 %v150_v36, %v108_v32  ;;  %v109_v40 = vsel %vm87_vm10, %v1400_v15, 0.0  ;;  %v110_v43 = vsel %vm88_vm11, %v1400_v15, 0.0  ;;  %vm129_vm12 = vcmp.eq.s32.totalorder %v64_v23, %v1410_v19  ;;  %p1323_p5 = pnand %p1322_p4, %p1316_p1 }
   0xf   :  { %v1449_v39 = vpack.c.bf16 %v184_v34, %v181_v33  ;;  %v187_v41 = vand.u32 4294901760, %v1439_v37  ;;  %vm130_vm13 = vcmp.eq.s32.totalorder %v65_v24, %v1410_v19  ;;  %v151_v44 = vsel %vm129_vm12, %v1405_v16, 0.0 }
  0x10   :  { %v190_v42 = vand.u32 4294901760, %v1441_v38  ;;  %v50_v45 = vadd.s32 56, %v1383_v5  ;;  %v66_v46 = vadd.s32 %v1381_v3, %v49_v20  ;;  %v152_v48 = vsel %vm130_vm13, %v1405_v16, 0.0 }
  0x11   :  { %1160 = vmatpush3.bf16.msra.mxu1 %v1449_v39  ;;  %1232 = vmatpush3.bf16.msra.mxu0 %v1449_v39  ;;  %v1474_v49 = vadd.f32 %v151_v44, %v109_v40  ;;  %v1476_v50 = vadd.f32 %v152_v48, %v110_v43  ;;  %v51_v53 = vadd.s32 64, %v1383_v5  ;;  %v52_v54 = vadd.s32 72, %v1383_v5 }
  0x12   :  { %1161 = vmatprep.subr.bf16.mxu1 %v1339_v2  ;;  %1233 = vmatprep.subr.bf16.mxu0 %v1339_v2  ;;  %v1468_v47 = vpack.c.bf16 %v190_v42, %v187_v41  ;;  %v67_v51 = vadd.s32 %v1381_v3, %v50_v45  ;;  %vm89_vm14 = vcmp.eq.s32.totalorder %v66_v46, %v1408_v18  ;;  %v53_v8 = vadd.s32 80, %v1383_v5 }
  0x13   :  { %v111_v52 = vsel %vm89_vm14, %v1400_v15, 0.0  ;;  %vm131_vm15 = vcmp.eq.s32.totalorder %v66_v46, %v1410_v19  ;;  %v193_v55 = vand.u32 4294901760, %v1474_v49  ;;  %v196_v56 = vand.u32 4294901760, %v1476_v50 }
  0x14   :  { %vm90_vm1 = vcmp.eq.s32.totalorder %v67_v51, %v1408_v18  ;;  %vm132_vm2 = vcmp.eq.s32.totalorder %v67_v51, %v1410_v19  ;;  %v153_v58 = vsel %vm131_vm15, %v1405_v16, 0.0  ;;  %v68_v60 = vadd.s32 %v1381_v3, %v51_v53 }
  0x15   :  { %1163 = vmatpush3.bf16.msra.mxu1 %v1468_v47  ;;  %1235 = vmatpush3.bf16.msra.mxu0 %v1468_v47  ;;  %v112_v57 = vsel %vm90_vm1, %v1400_v15, 0.0  ;;  %v154_v59 = vsel %vm132_vm2, %v1405_v16, 0.0  ;;  %v1509_v61 = vpack.c.bf16 %v196_v56, %v193_v55  ;;  %v1511_v62 = vadd.f32 %v153_v58, %v111_v52 }
  0x16   :  { %1164 = vmatprep.subr.bf16.mxu1 %v1339_v2  ;;  %1236 = vmatprep.subr.bf16.mxu0 %v1339_v2  ;;  %v1513_v63 = vadd.f32 %v154_v59, %v112_v57  ;;  %v69_v0 = vadd.s32 %v1381_v3, %v52_v54  ;;  %vm91_vm3 = vcmp.eq.s32.totalorder %v68_v60, %v1408_v18  ;;  %v54_v14 = vadd.s32 88, %v1383_v5 }
  0x17   :  { %vm133_vm4 = vcmp.eq.s32.totalorder %v68_v60, %v1410_v19  ;;  %v199_v1 = vand.u32 4294901760, %v1511_v62  ;;  %v113_v4 = vsel %vm91_vm3, %v1400_v15, 0.0  ;;  %v1535_v11 = vsub.f32 %v1425_v29, %v181_v33 }
  0x18   :  { %v155_v7 = vsel %vm133_vm4, %v1405_v16, 0.0  ;;  %v202_v9 = vand.u32 4294901760, %v1513_v63  ;;  %vm92_vm5 = vcmp.eq.s32.totalorder %v69_v0, %v1408_v18  ;;  %vm134_vm6 = vcmp.eq.s32.totalorder %v69_v0, %v1410_v19 }
  0x19   :  { %1166 = vmatpush3.bf16.msra.mxu1 %v1509_v61  ;;  %1238 = vmatpush3.bf16.msra.mxu0 %v1509_v61  ;;  %v1529_v10 = vadd.f32 %v155_v7, %v113_v4  ;;  %v114_v12 = vsel %vm92_vm5, %v1400_v15, 0.0  ;;  %v156_v13 = vsel %vm134_vm6, %v1405_v16, 0.0  ;;  %v1543_v17 = vsub.f32 %v1427_v30, %v184_v34  ;;  %v179_v34 = vld [vmem:[%s35_s7] sm:$0xff] }
  0x1a   :  { %1167 = vmatprep.subr.bf16.mxu1 %v1339_v2  ;;  %1239 = vmatprep.subr.bf16.mxu0 %v1339_v2  ;;  %v1549_v20 = vpack.c.bf16 %v202_v9, %v199_v1  ;;  %v1551_v21 = vadd.f32 %v156_v13, %v114_v12  ;;  %v70_v23 = vadd.s32 %v1381_v3, %v53_v8  ;;  %v55_v25 = vadd.s32 96, %v1383_v5 }
  0x1b   :  { %v205_v22 = vand.u32 4294901760, %v1529_v10  ;;  %v71_v24 = vadd.s32 %v1381_v3, %v54_v14  ;;  %v56_v26 = vadd.s32 104, %v1383_v5  ;;  %v1564_v27 = vsub.f32 %v1439_v37, %v187_v41 }
  0x1c   :  { %v208_v28 = vand.u32 4294901760, %v1551_v21  ;;  %v57_v29 = vadd.s32 112, %v1383_v5  ;;  %v58_v30 = vadd.s32 120, %v1383_v5  ;;  %vm93_vm7 = vcmp.eq.s32.totalorder %v70_v23, %v1408_v18 }
  0x1d   :  { %1169 = vmatpush3.bf16.msra.mxu1 %v1549_v20  ;;  %1241 = vmatpush3.bf16.msra.mxu0 %v1549_v20  ;;  %vm94_vm8 = vcmp.eq.s32.totalorder %v71_v24, %v1408_v18  ;;  %vm135_vm9 = vcmp.eq.s32.totalorder %v70_v23, %v1410_v19  ;;  %v1579_v31 = vsub.f32 %v1441_v38, %v190_v42  ;;  %v115_v32 = vsel %vm93_vm7, %v1400_v15, 0.0 }
  0x1e   :  { %1170 = vmatprep.subr.bf16.mxu1 %v1339_v2  ;;  %1242 = vmatprep.subr.bf16.mxu0 %v1339_v2  ;;  %v1585_v5 = vpack.c.bf16 %v208_v28, %v205_v22  ;;  %v116_v33 = vsel %vm94_vm8, %v1400_v15, 0.0  ;;  %vm136_vm10 = vcmp.eq.s32.totalorder %v71_v24, %v1410_v19  ;;  %v157_v35 = vsel %vm135_vm9, %v1405_v16, 0.0 }
  0x1f   :  { %v72_v36 = vadd.s32 %v1381_v3, %v55_v25  ;;  %v73_v37 = vadd.s32 %v1381_v3, %v56_v26  ;;  %v158_v38 = vsel %vm136_vm10, %v1405_v16, 0.0  ;;  %v1596_v40 = vadd.f32 %v157_v35, %v115_v32 }
  0x20   :  { %v74_v41 = vadd.s32 %v1381_v3, %v57_v29  ;;  %v75_v42 = vadd.s32 %v1381_v3, %v58_v30  ;;  %v1602_v43 = vadd.f32 %v158_v38, %v116_v33  ;;  %v1606_v44 = vand.u32 4294901760, %v179_v34 }
  0x21   :  { %1172 = vmatpush3.bf16.msra.mxu1 %v1585_v5  ;;  %1244 = vmatpush3.bf16.msra.mxu0 %v1585_v5  ;;  %vm95_vm11 = vcmp.eq.s32.totalorder %v72_v36, %v1408_v18  ;;  %vm96_vm12 = vcmp.eq.s32.totalorder %v73_v37, %v1408_v18  ;;  %v211_v45 = vand.u32 4294901760, %v1596_v40  ;;  %vm137_vm13 = vcmp.eq.s32.totalorder %v72_v36, %v1410_v19 }
  0x22   :  { %1173 = vmatprep.subr.bf16.mxu1 %v1339_v2  ;;  %1245 = vmatprep.subr.bf16.mxu0 %v1339_v2  ;;  %v117_v46 = vsel %vm95_vm11, %v1400_v15, 0.0  ;;  %v118_v48 = vsel %vm96_vm12, %v1400_v15, 0.0  ;;  %v214_v3 = vand.u32 4294901760, %v1602_v43  ;;  %vm138_vm14 = vcmp.eq.s32.totalorder %v73_v37, %v1410_v19 }
  0x23   :  { %v159_v51 = vsel %vm137_vm13, %v1405_v16, 0.0  ;;  %vm97_vm15 = vcmp.eq.s32.totalorder %v74_v41, %v1408_v18  ;;  %v1619_v52 = vsub.f32 %v1474_v49, %v193_v55  ;;  %v160_v53 = vsel %vm138_vm14, %v1405_v16, 0.0 }
  0x24   :  { %v1622_v54 = vadd.f32 %v159_v51, %v117_v46  ;;  %vm98_vm1 = vcmp.eq.s32.totalorder %v75_v42, %v1408_v18  ;;  %v1629_v57 = vpack.c.bf16 %v214_v3, %v211_v45  ;;  %v1631_v58 = vadd.f32 %v160_v53, %v118_v48 }
  0x25   :  { %v119_v59 = vsel %vm97_vm15, %v1400_v15, 0.0  ;;  %v274_v60 = vand.u32 4294901760, %v1535_v11  ;;  %v120_v55 = vsel %vm98_vm1, %v1400_v15, 0.0  ;;  %vm139_vm2 = vcmp.eq.s32.totalorder %v74_v41, %v1410_v19 }
  0x26   :  { %v217_v49 = vand.u32 4294901760, %v1622_v54  ;;  %vm140_vm3 = vcmp.eq.s32.totalorder %v75_v42, %v1410_v19  ;;  %1175 = vmatpush3.bf16.msra.mxu1 %v1629_v57  ;;  %1247 = vmatpush3.bf16.msra.mxu0 %v1629_v57  ;;  %v220_v18 = vand.u32 4294901760, %v1631_v58  ;;  %v161_v0 = vsel %vm139_vm2, %v1405_v16, 0.0 }
  0x27   :  { %v162_v4 = vsel %vm140_vm3, %v1405_v16, 0.0  ;;  %v1645_v7 = vsub.f32 %v179_v34, %v1606_v44  ;;  %v1650_v15 = vsub.f32 %v1476_v50, %v196_v56  ;;  %1176 = vmatprep.subr.bf16.mxu1 %v1339_v2  ;;  %1248 = vmatprep.subr.bf16.mxu0 %v1339_v2  ;;  %v1654_v19 = vadd.f32 %v161_v0, %v119_v59 }
  0x28   :  { %v1656_v8 = vadd.f32 %v162_v4, %v120_v55  ;;  %v281_v12 = vand.u32 4294901760, %v1543_v17  ;;  %v1662_v16 = vsub.f32 %v1511_v62, %v199_v1  ;;  %v1668_v50 = vpack.c.bf16 %v220_v18, %v217_v49 }
  0x29   :  { %v263_v56 = vand.u32 4294901760, %v1645_v7  ;;  %v275_v13 = vsub.f32 %v1535_v11, %v274_v60  ;;  %v1675_v14 = vsub.f32 %v1513_v63, %v202_v9  ;;  %v223_v23 = vand.u32 4294901760, %v1654_v19 }
  0x2a   :  { %v226_v62 = vand.u32 4294901760, %v1656_v8  ;;  %v282_v1 = vsub.f32 %v1543_v17, %v281_v12  ;;  %1178 = vmatpush3.bf16.msra.mxu1 %v1668_v50  ;;  %1250 = vmatpush3.bf16.msra.mxu0 %v1668_v50  ;;  %v288_v26 = vand.u32 4294901760, %v1564_v27  ;;  %v295_v29 = vand.u32 4294901760, %v1579_v31 }
  0x2b   :  { %v264_v24 = vsub.f32 %v1645_v7, %v263_v56  ;;  %v276_v25 = vand.u32 4294901760, %v275_v13  ;;  %v1688_v63 = vsub.f32 %v1529_v10, %v205_v22  ;;  %1179 = vmatprep.subr.bf16.mxu1 %v1339_v2  ;;  %1251 = vmatprep.subr.bf16.mxu0 %v1339_v2  ;;  %v1701_v32 = vsub.f32 %v1551_v21, %v208_v28 }
  0x2c   :  { %v1696_v9 = vpack.c.bf16 %v226_v62, %v223_v23  ;;  %v283_v30 = vand.u32 4294901760, %v282_v1  ;;  %v1255_v33 = vpack.c.bf16 %v281_v12, %v274_v60  ;;  %v289_v10 = vsub.f32 %v1564_v27, %v288_v26 }
  0x2d   :  { %v296_v22 = vsub.f32 %v1579_v31, %v295_v29  ;;  %v265_v34 = vand.u32 4294901760, %v264_v24  ;;  %v302_v36 = vand.u32 4294901760, %v1619_v52  ;;  %v309_v37 = vand.u32 4294901760, %v1650_v15 }
  0x2e   :  { %v1183_v35 = vpack.c.bf16 %v283_v30, %v276_v25  ;;  %1181 = vmatpush3.bf16.msra.mxu1 %v1696_v9  ;;  %1253 = vmatpush3.bf16.msra.mxu0 %v1696_v9  ;;  %v290_v38 = vand.u32 4294901760, %v289_v10  ;;  %v316_v21 = vand.u32 4294901760, %v1662_v16  ;;  %v323_v28 = vand.u32 4294901760, %v1675_v14 }
  0x2f   :  { %v297_v41 = vand.u32 4294901760, %v296_v22  ;;  %1182 = vmatprep.subr.bf16.mxu1 %v1339_v2  ;;  %1254 = vmatprep.subr.bf16.mxu0 %v1339_v2  ;;  %v303_v42 = vsub.f32 %v1619_v52, %v302_v36  ;;  %v310_v46 = vsub.f32 %v1650_v15, %v309_v37  ;;  %v1718_v48 = vsub.f32 %v1596_v40, %v211_v45 }
  0x30   :  { %v1723_v51 = vsub.f32 %v1602_v43, %v214_v3  ;;  %v1258_v59 = vpack.c.bf16 %v295_v29, %v288_v26  ;;  %v330_v60 = vand.u32 4294901760, %v1688_v63  ;;  %v337_v55 = vand.u32 4294901760, %v1701_v32 }
  0x31   :  { %981 = vmatmul.mubr.f32.vlgmr.msra.gmra.mrb[0].mxu1 %v265_v34  ;;  %1086 = vmatmul.mubr.f32.vlgmr.msra.gmra.mrb[0].mxu0 %v263_v56  ;;  %v1186_v53 = vpack.c.bf16 %v297_v41, %v290_v38  ;;  %v304_v0 = vand.u32 4294901760, %v303_v42  ;;  %v311_v4 = vand.u32 4294901760, %v310_v46  ;;  %v317_v40 = vsub.f32 %v1662_v16, %v316_v21 }
  0x32   :  { %1184 = vmatpush3.bf16.msra.mxu1 %v1183_v35  ;;  %1256 = vmatpush3.bf16.msra.mxu0 %v1255_v33  ;;  %v324_v45 = vsub.f32 %v1675_v14, %v323_v28  ;;  %v1734_v43 = vsub.f32 %v1622_v54, %v217_v49  ;;  %v1739_v3 = vsub.f32 %v1631_v58, %v220_v18  ;;  %v344_v1 = vand.u32 4294901760, %v1718_v48 }
  0x33   :  { %1185 = vmatprep.subr.bf16.mxu1 %v1339_v2  ;;  %1257 = vmatprep.subr.bf16.mxu0 %v1339_v2  ;;  %v1261_v12 = vpack.c.bf16 %v309_v37, %v302_v36  ;;  %v331_v56 = vsub.f32 %v1688_v63, %v330_v60  ;;  %v338_v13 = vsub.f32 %v1701_v32, %v337_v55  ;;  %v318_v49 = vand.u32 4294901760, %v317_v40 }
  0x34   :  { %1015 = vmatprep.mubr.msk.f32.mxu1 %vm1340_vm0, %v1341_v6  ;;  %1120 = vmatprep.mubr.msk.f32.mxu0 %vm1340_vm0, %v1341_v6  ;;  %v1189_v54 = vpack.c.bf16 %v311_v4, %v304_v0  ;;  %v325_v24 = vand.u32 4294901760, %v324_v45  ;;  %v351_v58 = vand.u32 4294901760, %v1723_v51  ;;  %v1754_v18 = vsub.f32 %v1654_v19, %v223_v23 }
  0x35   :  { %v1759_v25 = vsub.f32 %v1656_v8, %v226_v62  ;;  %v1264_v26 = vpack.c.bf16 %v323_v28, %v316_v21  ;;  %v332_v29 = vand.u32 4294901760, %v331_v56  ;;  %v339_v30 = vand.u32 4294901760, %v338_v13 }
  0x36   :  { %1187 = vmatpush3.bf16.msra.mxu1 %v1186_v53  ;;  %1259 = vmatpush3.bf16.msra.mxu0 %v1258_v59  ;;  %v345_v33 = vsub.f32 %v1718_v48, %v344_v1  ;;  %v1192_v10 = vpack.c.bf16 %v325_v24, %v318_v49  ;;  %v352_v22 = vsub.f32 %v1723_v51, %v351_v58  ;;  %v358_v34 = vand.u32 4294901760, %v1734_v43 }
  0x37   :  { %1188 = vmatprep.subr.bf16.mxu1 %v1339_v2  ;;  %1260 = vmatprep.subr.bf16.mxu0 %v1339_v2  ;;  %v365_v19 = vand.u32 4294901760, %v1739_v3  ;;  %v1195_v8 = vpack.c.bf16 %v339_v30, %v332_v29  ;;  %v1267_v23 = vpack.c.bf16 %v337_v55, %v330_v60  ;;  %v372_v35 = vand.u32 4294901760, %v1754_v18 }
  0x38   :  { %v346_v62 = vand.u32 4294901760, %v345_v33  ;;  %v353_v36 = vand.u32 4294901760, %v352_v22  ;;  %v359_v37 = vsub.f32 %v1734_v43, %v358_v34  ;;  %v379_v41 = vand.u32 4294901760, %v1759_v25 }
  0x39   :  { %v366_v38 = vsub.f32 %v1739_v3, %v365_v19  ;;  %v1270_v21 = vpack.c.bf16 %v351_v58, %v344_v1  ;;  %v373_v28 = vsub.f32 %v1754_v18, %v372_v35  ;;  %v1273_v55 = vpack.c.bf16 %v365_v19, %v358_v34 }
  0x3a   :  { %1190 = vmatpush3.bf16.msra.mxu1 %v1189_v54  ;;  %1262 = vmatpush3.bf16.msra.mxu0 %v1261_v12  ;;  %v1198_v42 = vpack.c.bf16 %v353_v36, %v346_v62  ;;  %v360_v46 = vand.u32 4294901760, %v359_v37  ;;  %v380_v59 = vsub.f32 %v1759_v25, %v379_v41  ;;  %v1276_v45 = vpack.c.bf16 %v379_v41, %v372_v35 }
  0x3b   :  { %1191 = vmatprep.subr.bf16.mxu1 %v1339_v2  ;;  %1263 = vmatprep.subr.bf16.mxu0 %v1339_v2  ;;  %v367_v53 = vand.u32 4294901760, %v366_v38  ;;  %v374_v0 = vand.u32 4294901760, %v373_v28  ;;  %v1207_v12 = vpack.c.bf16 %v1543_v17, %v1535_v11  ;;  %v1210_v56 = vpack.c.bf16 %v1579_v31, %v1564_v27 }
  0x3c   :  { %v381_v4 = vand.u32 4294901760, %v380_v59  ;;  %v1213_v11 = vpack.c.bf16 %v1650_v15, %v1619_v52  ;;  %v1228_v17 = vpack.c.bf16 %v1759_v25, %v1754_v18 }
  0x3d   :  { %v1201_v60 = vpack.c.bf16 %v367_v53, %v360_v46 }
  0x3e   :  { %1193 = vmatpush3.bf16.msra.mxu1 %v1192_v10  ;;  %1265 = vmatpush3.bf16.msra.mxu0 %v1264_v26  ;;  %v1204_v40 = vpack.c.bf16 %v381_v4, %v374_v0 }
  0x3f   :  { %1194 = vmatprep.subr.bf16.mxu1 %v1339_v2  ;;  %1266 = vmatprep.subr.bf16.mxu0 %v1339_v2 }
  0x42   :  { %1196 = vmatpush3.bf16.msra.mxu1 %v1195_v8  ;;  %1268 = vmatpush3.bf16.msra.mxu0 %v1267_v23 }
  0x43   :  { %1197 = vmatprep.subr.bf16.mxu1 %v1339_v2  ;;  %1269 = vmatprep.subr.bf16.mxu0 %v1339_v2 }
  0x46   :  { %1199 = vmatpush3.bf16.msra.mxu1 %v1198_v42  ;;  %1271 = vmatpush3.bf16.msra.mxu0 %v1270_v21 }
  0x47   :  { %1200 = vmatprep.subr.bf16.mxu1 %v1339_v2  ;;  %1272 = vmatprep.subr.bf16.mxu0 %v1339_v2 }
  0x4a   :  { %1202 = vmatpush3.bf16.msra.mxu1 %v1201_v60  ;;  %1274 = vmatpush3.bf16.msra.mxu0 %v1273_v55 }
  0x4b   :  { %1203 = vmatprep.subr.bf16.mxu1 %v1339_v2  ;;  %1275 = vmatprep.subr.bf16.mxu0 %v1339_v2 }
  0x4e   :  { %1205 = vmatpush3.bf16.msra.mxu1 %v1204_v40  ;;  %1277 = vmatpush3.bf16.msra.mxu0 %v1276_v45 }
  0x4f   :  { %1206 = vmatprep.subr.bf16.mxu1 %v1339_v2  ;;  %1278 = vmatprep.subr.bf16.mxu0 %v1339_v2 }
  0x51   :  { %1016 = vmatmul.mubr.f32.vlgmr.msra.gmra.mrb[0].mxu1 %v1606_v44  ;;  %1121 = vmatmul.mubr.f32.vlgmr.msra.gmra.mrb[0].mxu0 %v1606_v44 }
  0x52   :  { %1208 = vmatpush3.bf16.msra.mxu1 %v1207_v12  ;;  %1280 = vmatpush3.bf16.msra.mxu0 %v1449_v39  ;;  %v1216_v39 = vpack.c.bf16 %v1675_v14, %v1662_v16 }
  0x53   :  { %1209 = vmatprep.subr.bf16.mxu1 %v1339_v2  ;;  %1281 = vmatprep.subr.bf16.mxu0 %v1339_v2 }
  0x54   :  { %1050 = vmatprep.mubr.msk.f32.mxu1 %vm1340_vm0, %v1341_v6  ;;  %1155 = vmatprep.mubr.msk.f32.mxu0 %vm1340_vm0, %v1341_v6  ;;  %v1219_v6 = vpack.c.bf16 %v1701_v32, %v1688_v63 }
  0x56   :  { %1211 = vmatpush3.bf16.msra.mxu1 %v1210_v56  ;;  %1283 = vmatpush3.bf16.msra.mxu0 %v1468_v47  ;;  %v1222_v47 = vpack.c.bf16 %v1723_v51, %v1718_v48 }
  0x57   :  { %1212 = vmatprep.subr.bf16.mxu1 %v1339_v2  ;;  %1284 = vmatprep.subr.bf16.mxu0 %v1339_v2 }
  0x5a   :  { %1214 = vmatpush3.bf16.msra.mxu1 %v1213_v11  ;;  %1286 = vmatpush3.bf16.msra.mxu0 %v1509_v61  ;;  %v1225_v61 = vpack.c.bf16 %v1739_v3, %v1734_v43 }
  0x5b   :  { %1215 = vmatprep.subr.bf16.mxu1 %v1339_v2  ;;  %1287 = vmatprep.subr.bf16.mxu0 %v1339_v2 }
  0x5e   :  { %1217 = vmatpush3.bf16.msra.mxu1 %v1216_v39  ;;  %1289 = vmatpush3.bf16.msra.mxu0 %v1549_v20 }
  0x5f   :  { %1218 = vmatprep.subr.bf16.mxu1 %v1339_v2  ;;  %1290 = vmatprep.subr.bf16.mxu0 %v1339_v2 }
  0x62   :  { %1220 = vmatpush3.bf16.msra.mxu1 %v1219_v6  ;;  %1292 = vmatpush3.bf16.msra.mxu0 %v1585_v5 }
  0x63   :  { %1221 = vmatprep.subr.bf16.mxu1 %v1339_v2  ;;  %1293 = vmatprep.subr.bf16.mxu0 %v1339_v2 }
  0x66   :  { %1223 = vmatpush3.bf16.msra.mxu1 %v1222_v47  ;;  %1295 = vmatpush3.bf16.msra.mxu0 %v1629_v57 }
  0x67   :  { %1224 = vmatprep.subr.bf16.mxu1 %v1339_v2  ;;  %1296 = vmatprep.subr.bf16.mxu0 %v1339_v2 }
  0x6a   :  { %1226 = vmatpush3.bf16.msra.mxu1 %v1225_v61  ;;  %1298 = vmatpush3.bf16.msra.mxu0 %v1668_v50 }
  0x6b   :  { %1227 = vmatprep.subr.bf16.mxu1 %v1339_v2  ;;  %1299 = vmatprep.subr.bf16.mxu0 %v1339_v2 }
  0x6e   :  { %1229 = vmatpush3.bf16.msra.mxu1 %v1228_v17  ;;  %1301 = vmatpush3.bf16.msra.mxu0 %v1696_v9 }
  0x71   :  { %1051 = vmatmul.mubr.f32.vlgmr.msra.gmra.mrb[0].mxu1 %v1645_v7  ;;  %1156 = vmatmul.mubr.f32.vlgmr.msra.gmra.mrb[0].mxu0 %v1606_v44 }
 0x144   :  { %v522_v20 = vpop.f32.mrb[0].mxu1  ;;  %v817_v27 = vpop.f32.mrb[0].mxu0 }
 0x145   :  { %v1302_v31 = vadd.f32 %v817_v27, %v522_v20  ;;  %v1052_v5 = vpop.f32.mrb[1].mxu1  ;;  %v1157_v52 = vpop.f32.mrb[1].mxu0 }
 0x147   :  { %821 = vst [vmem:[#allocation4] sm:$0xff] %v1302_v31 }
 0x148   :  { %1326 = shalt.err (!%p1323_p5)
}
 0x149   :  { %s1327_s12 = scalar_lea.hbm %s1846_s5, 128 }
 0x14a   :  { %p1328_p6 = scmp.ne.s32.totalorder %s1846_s5, %s1327_s12  ;;  %p1331_p7 = scmp.lt.u32.totalorder %s1327_s12, %s1846_s5 }
 0x14c   :  { %p1333_p8 = pnand %p1331_p7, %p1328_p6 }
 0x14e   :  { %1336 = shalt.err (!%p1333_p8)
}
 0x14f   :  { %831 = dma.vmem_to_hbm [thread:$0]  %s829_s8, 128, %s1846_s5, [#allocation5]  }
 0x150   :  { %1337 = dma.done.wait [#allocation5], 128  }
 0x151   :  { %1338 = vsyncadd [#allocation5], 4294967168 }
 0x152   :  { %835 = vsyncpa [#allocation5], 1 }

</bundles_post_ra>
